<compile_context>
chip_gen: v7x
topology: tpu7x:2x2x1
jax: 0.10.0
libtpu: 0.0.40
codegen_flags: <defaults>
</compile_context>

<pallas_src>
import functools
import numpy as np
import jax
import jax.numpy as jnp
from jax import lax
from jax.experimental import pallas as pl
from jax.experimental.pallas import tpu as pltpu

EPS_NORM = 1e-12   # F.normalize eps
EPS_GN = 1e-5      # nn.GroupNorm default eps


def _pick_tile(n, target=128):
    """Largest multiple of 8 that divides n and is <= target (else full n)."""
    cands = [t for t in range(8, min(target, n) + 1, 8) if n % t == 0]
    return max(cands) if cands else n


def _vmem_limit(block_bytes):
    """Scoped-VMEM limit sized to the double-buffered blocks (+ headroom)."""
    return int(min(48 * 2**20, max(16 * 2**20, 6 * block_bytes)))


# ----------------------------- Pallas kernels ------------------------------

def _dist_kernel(x_ref, o_ref, *, tq):
    """Pairwise squared distance of channel-normalized nodes.

    One grid step computes a (TQ, N) row-tile of the (N, N) distance matrix for
    one batch. Layout is (C, N): C on sublanes (reduce axis), N lane-dense.
    """
    i = pl.program_id(1)

    xm = x_ref[0]                                                      # (C, N) f32
    nrm_k = jnp.sqrt(jnp.sum(xm * xm, axis=0, keepdims=True))          # (1, N)
    xn = xm / jnp.maximum(nrm_k, EPS_NORM)                             # F.normalize(dim=C)
    sq_k = jnp.sum(xn * xn, axis=0, keepdims=True)                     # (1, N) exact key-side sq

    start = pl.multiple_of(i * tq, tq)
    q = x_ref[0, :, pl.ds(start, tq)]                                  # (C, TQ) query slice
    nrm_q = jnp.sqrt(jnp.sum(q * q, axis=0, keepdims=True))            # (1, TQ)
    qn = q / jnp.maximum(nrm_q, EPS_NORM)

    # bf16 MXU operands, f32 accumulate; contract over the C (sublane) axis.
    inner = lax.dot_general(qn.astype(jnp.bfloat16), xn.astype(jnp.bfloat16),
                            (((0,), (0,)), ((), ())),
                            preferred_element_type=jnp.float32)        # (TQ, N)

    # ||q||^2 == 1 for normalized rows (per-row constant -> top-k unaffected;
    # exact key-side sq_k keeps zero-key rows correct).
    o_ref[0] = (1.0 - 2.0 * inner) + sq_k


def _mrconv_kernel(x_ref, xjm_ref, w_ref, p_ref, o_ref, *, group_count):
    """Max-relative graph conv + grouped 1x1 conv + GroupNorm + ReLU (one batch).

    x_ref/xjm_ref: (1, C, N); w_ref: (Cout, 2C) dense merged grouped-conv weight
    (zero outside groups -> exact equivalence); p_ref: (Cout, 3) = [bias|gamma|beta].
    """
    x = x_ref[0]                                                       # (C, N) f32
    rel = xjm_ref[0] - x                                               # max_k(x_j) - x_i
    feat = jnp.concatenate([x, rel], axis=0).astype(jnp.bfloat16)      # (2C, N) bf16
    w = w_ref[...].astype(jnp.bfloat16)                                # (Cout, 2C) bf16

    bias = p_ref[:, 0:1]                                               # (Cout, 1)
    y = jnp.dot(w, feat, preferred_element_type=jnp.float32) + bias    # (Cout, N) f32

    # GroupNorm(group_count, Cout): group stats on VPU (no gmask matmul / extra DMA).
    cout, n = y.shape
    cout_g = cout // group_count
    cnt = jnp.float32(cout_g * n)
    s = jnp.sum(y, axis=1, keepdims=True)                              # (Cout, 1)
    ss = jnp.sum(y * y, axis=1, keepdims=True)                         # (Cout, 1)
    gid = lax.broadcasted_iota(jnp.int32, (cout, 1), 0) // cout_g      # channel -> group

    mean_c = jnp.zeros((cout, 1), jnp.float32)
    inv_c = jnp.zeros((cout, 1), jnp.float32)
    for g in range(group_count):                                       # static, small unroll
        sel = gid == g
        sg = jnp.sum(jnp.where(sel, s, 0.0))
        ssg = jnp.sum(jnp.where(sel, ss, 0.0))
        m = sg / cnt
        v = jnp.maximum(ssg / cnt - m * m, 0.0)                        # clamp single-pass var
        mean_c = jnp.where(sel, m, mean_c)
        inv_c = jnp.where(sel, lax.rsqrt(v + EPS_GN), inv_c)

    gamma = p_ref[:, 1:2]
    beta = p_ref[:, 2:3]
    o_ref[0] = jnp.maximum((y - mean_c) * inv_c * gamma + beta, 0.0)   # ReLU


# ------------------------------ JAX wrapper --------------------------------

def dygraph_conv_forward(x5, params, *, k=9, groups=4, dist_tile=128, return_aux=False):
    B, C, D, H, W = x5.shape
    N = D * H * W
    Cout = params["pvec"].shape[0]
    x = x5.reshape(B, C, N).astype(jnp.float32)

    # --- KNN graph: row-tiled distance matrix in Pallas, top-k as glue ---
    tq = _pick_tile(N, dist_tile)
    dist = pl.pallas_call(
        functools.partial(_dist_kernel, tq=tq),
        out_shape=jax.ShapeDtypeStruct((B, N, N), jnp.float32),
        grid=(B, N // tq),
        in_specs=[pl.BlockSpec((1, C, N), lambda b, i: (b, 0, 0))],
        out_specs=pl.BlockSpec((1, tq, N), lambda b, i: (b, i, 0)),
        compiler_params=pltpu.CompilerParams(
            dimension_semantics=("parallel", "parallel"),
            vmem_limit_bytes=_vmem_limit((C * N + tq * N) * 4),
        ),
    )(x)
    _, nn_idx = jax.lax.top_k(-dist, k)                  # (B, N, k) = edge_index[0]
    # edge_index[1] (center idx) gather is the identity and is folded into the kernel.

    # Fused gather+max in the wrapper: only a (B,C,N) tensor reaches the kernel.
    xj_max = jax.vmap(lambda xb, ib: jnp.max(xb[:, ib], axis=-1))(x, nn_idx)   # (B, C, N)

    out = pl.pallas_call(
        functools.partial(_mrconv_kernel, group_count=groups),
        out_shape=jax.ShapeDtypeStruct((B, Cout, N), jnp.float32),
        grid=(B,),
        in_specs=[
            pl.BlockSpec((1, C, N), lambda b: (b, 0, 0)),
            pl.BlockSpec((1, C, N), lambda b: (b, 0, 0)),
            pl.BlockSpec((Cout, 2 * C), lambda b: (0, 0)),
            pl.BlockSpec((Cout, 3), lambda b: (0, 0)),
        ],
        out_specs=pl.BlockSpec((1, Cout, N), lambda b: (b, 0, 0)),
        compiler_params=pltpu.CompilerParams(
            dimension_semantics=("parallel",),
            vmem_limit_bytes=_vmem_limit((2 * C * N + Cout * N + Cout * (2 * C + 3)) * 4),
        ),
    )(x, xj_max, params["wfull"], params["pvec"])

    out = out.reshape(B, Cout, D, H, W)   # Dropout3d(0.3): eval-mode identity
    if return_aux:
        return out, dist, nn_idx
    return out


# --------------------------- parameter init --------------------------------

def init_params(key, C, Cout, groups=4):
    k1, k2, k3, k4 = jax.random.split(key, 4)
    cin_g = 2 * C // groups      # grouped-conv in-channels per group
    cout_g = Cout // groups
    wg = jax.random.normal(k1, (Cout, cin_g), jnp.float32) / np.sqrt(cin_g)
    bias = 0.1 * jax.random.normal(k2, (Cout,), jnp.float32)
    gamma = 1.0 + 0.1 * jax.random.normal(k3, (Cout,), jnp.float32)
    beta = 0.1 * jax.random.normal(k4, (Cout,), jnp.float32)

    # Scatter grouped weights (interleaved [x0, r0, x1, r1, ...] channel order) into a
    # single dense (Cout, 2C) matrix acting on stacked [x ; rel] (zero outside groups).
    wfull = np.zeros((Cout, 2 * C), np.float32)
    wg_np = np.asarray(wg)
    for o in range(Cout):
        g = o // cout_g
        for l in range(cin_g):
            gi = g * cin_g + l
            ch = gi // 2
            col = ch if gi % 2 == 0 else C + ch
            wfull[o, col] = wg_np[o, l]

    pvec = jnp.stack([bias, gamma, beta], axis=1)        # (Cout, 3)
    return dict(wfull=jnp.asarray(wfull), pvec=pvec,
                bias=bias, gamma=gamma, beta=beta, wg=wg)


# ------------------------- pure-JAX reference ------------------------------

def reference_dist(x5):
    B, C, D, H, W = x5.shape
    N = D * H * W
    x = x5.reshape(B, C, N)
    xn = x / jnp.maximum(jnp.sqrt(jnp.sum(x * x, axis=1, keepdims=True)), EPS_NORM)
    xt = jnp.transpose(xn, (0, 2, 1))
    sq = jnp.sum(xt * xt, axis=-1, keepdims=True)
    inner = jnp.einsum("bnc,bmc->bnm", xt, xt)
    return sq - 2.0 * inner + jnp.transpose(sq, (0, 2, 1))


def reference_forward(x5, params, nn_idx, *, groups=4, operand_dtype=jnp.float32):
    """Pure-JAX MRConv+BasicConv reference.

    operand_dtype=bfloat16 mirrors the kernel's bf16 MXU operand rounding (products
    are exact in f32), giving a tight structural check; f32 is the torch-exact path.
    """
    B, C, D, H, W = x5.shape
    N = D * H * W
    Cout = params["bias"].shape[0]
    x = x5.reshape(B, C, N)
    xj = jax.vmap(lambda xb, ib: xb[:, ib])(x, nn_idx)            # (B, C, N, k)
    rel = jnp.max(xj - x[..., None], axis=-1)                     # (B, C, N)
    feat = jnp.stack([x, rel], axis=2).reshape(B, 2 * C, N)       # interleaved, as torch cat+reshape
    feat = feat.astype(operand_dtype).astype(jnp.float32)
    wg = params["wg"].astype(operand_dtype).astype(jnp.float32)
    cin_g, cout_g = 2 * C // groups, Cout // groups
    outs = []
    for g in range(groups):
        fg = feat[:, g * cin_g:(g + 1) * cin_g]
        w = wg[g * cout_g:(g + 1) * cout_g]
        outs.append(jnp.einsum("oc,bcn->bon", w, fg))
    y = jnp.concatenate(outs, axis=1) + params["bias"][None, :, None]
    yg = y.reshape(B, groups, cout_g * N)
    mean = yg.mean(-1, keepdims=True)
    var = yg.var(-1, keepdims=True)
    yn = ((yg - mean) / jnp.sqrt(var + EPS_GN)).reshape(B, Cout, N)
    out = jnp.maximum(yn * params["gamma"][None, :, None] + params["beta"][None, :, None], 0.0)
    return out.reshape(B, Cout, D, H, W)


# --------------------------------- main -------------------------------------

if __name__ == "__main__":
    B, C, D, H, W = 2, 8, 4, 8, 8       # N = D*H*W = 256 -> two 128-row dist tiles
    Cout, K, GROUPS = 16, 9, 4

    key = jax.random.PRNGKey(0)
    kx, kp = jax.random.split(key)
    x = jax.random.normal(kx, (B, C, D, H, W), jnp.float32)
    params = init_params(kp, C, Cout, GROUPS)

    out, dist, nn_idx = dygraph_conv_forward(x, params, k=K, groups=GROUPS, return_aux=True)
    out = jax.block_until_ready(out)
    assert out.shape == (B, Cout, D, H, W)

    # distance matrix vs pure-f32 reference (slack covers bf16 MXU operand rounding)
    np.testing.assert_allclose(np.asarray(dist), np.asarray(reference_dist(x)),
                               rtol=2e-2, atol=2e-2)

    # tight structural check: reference with bf16-rounded matmul operands
    ref_bf = reference_forward(x, params, nn_idx, groups=GROUPS, operand_dtype=jnp.bfloat16)
    np.testing.assert_allclose(np.asarray(out), np.asarray(ref_bf), rtol=2e-3, atol=2e-3)

    # loose check against the exact-f32 (torch-semantics) reference
    ref_f32 = reference_forward(x, params, nn_idx, groups=GROUPS, operand_dtype=jnp.float32)
    np.testing.assert_allclose(np.asarray(out), np.asarray(ref_f32), rtol=5e-2, atol=5e-2)

    print("KERNEL_OK")
</pallas_src>

<mosaic_0001>
module attributes {stable_mosaic.version = 11 : i64} {
  func.func @_dist_kernel(%arg0: i32, %arg1: i32, %arg2: memref<1x8x256xf32, #tpu.memory_space<vmem>>, %arg3: memref<1x128x256xf32, #tpu.memory_space<vmem>>) attributes {dimension_semantics = [#tpu.dimension_semantics<parallel>, #tpu.dimension_semantics<parallel>], iteration_bounds = array<i64: 2, 2>, scalar_prefetch = 0 : i64, scratch_operands = 0 : i64, tpu.core_type = #tpu.core_type<tc>, window_params = [{transform_indices = @transform_0, window_bounds = array<i64: 1, 8, 256>}, {transform_indices = @transform_1, window_bounds = array<i64: 1, 128, 256>}]} {
    %c0 = arith.constant 0 : index
    %c0_0 = arith.constant 0 : index
    %c0_1 = arith.constant 0 : index
    %0 = vector.load %arg2[%c0, %c0_0, %c0_1] : memref<1x8x256xf32, #tpu.memory_space<vmem>>, vector<1x8x256xf32>
    %1 = vector.shape_cast %0 : vector<1x8x256xf32> to vector<8x256xf32>
    %2 = arith.mulf %1, %1 : vector<8x256xf32>
    %cst = arith.constant dense<0.000000e+00> : vector<256xf32>
    %3 = vector.multi_reduction <add>, %2, %cst [0] : vector<8x256xf32> to vector<256xf32>
    %4 = vector.shape_cast %3 : vector<256xf32> to vector<1x256xf32>
    %5 = math.sqrt %4 : vector<1x256xf32>
    %cst_2 = arith.constant 9.99999996E-13 : f32
    %6 = vector.broadcast %cst_2 : f32 to vector<1x256xf32>
    %7 = arith.maximumf %5, %6 : vector<1x256xf32>
    %8 = vector.broadcast %7 : vector<1x256xf32> to vector<8x256xf32>
    %9 = arith.divf %1, %8 : vector<8x256xf32>
    %10 = arith.mulf %9, %9 : vector<8x256xf32>
    %cst_3 = arith.constant dense<0.000000e+00> : vector<256xf32>
    %11 = vector.multi_reduction <add>, %10, %cst_3 [0] : vector<8x256xf32> to vector<256xf32>
    %12 = vector.shape_cast %11 : vector<256xf32> to vector<1x256xf32>
    %c128_i32 = arith.constant 128 : i32
    %13 = arith.muli %arg1, %c128_i32 : i32
    %14 = tpu.assume_multiple %13, 128 : i32
    %c0_4 = arith.constant 0 : index
    %c0_5 = arith.constant 0 : index
    %15 = arith.index_cast %14 : i32 to index
    %16 = vector.load %arg2[%c0_4, %c0_5, %15] : memref<1x8x256xf32, #tpu.memory_space<vmem>>, vector<1x8x128xf32>
    %17 = vector.shape_cast %16 : vector<1x8x128xf32> to vector<8x128xf32>
    %18 = arith.mulf %17, %17 : vector<8x128xf32>
    %cst_6 = arith.constant dense<0.000000e+00> : vector<128xf32>
    %19 = vector.multi_reduction <add>, %18, %cst_6 [0] : vector<8x128xf32> to vector<128xf32>
    %20 = vector.shape_cast %19 : vector<128xf32> to vector<1x128xf32>
    %21 = math.sqrt %20 : vector<1x128xf32>
    %cst_7 = arith.constant 9.99999996E-13 : f32
    %22 = vector.broadcast %cst_7 : f32 to vector<1x128xf32>
    %23 = arith.maximumf %21, %22 : vector<1x128xf32>
    %24 = vector.broadcast %23 : vector<1x128xf32> to vector<8x128xf32>
    %25 = arith.divf %17, %24 : vector<8x128xf32>
    %26 = arith.truncf %25 : vector<8x128xf32> to vector<8x128xbf16>
    %27 = arith.truncf %9 : vector<8x256xf32> to vector<8x256xbf16>
    %cst_8 = arith.constant dense<0.000000e+00> : vector<128x256xf32>
    %28 = tpu.matmul %26, %27, %cst_8 {dimension_numbers = #tpu.dot_dimension_numbers<[0], [0], [1], [1], [0, 1, 1, 1], [], []>} : vector<8x128xbf16>, vector<8x256xbf16>, vector<128x256xf32> -> vector<128x256xf32>
    %cst_9 = arith.constant 2.000000e+00 : f32
    %29 = vector.broadcast %cst_9 : f32 to vector<128x256xf32>
    %30 = arith.mulf %29, %28 : vector<128x256xf32>
    %cst_10 = arith.constant 1.000000e+00 : f32
    %31 = vector.broadcast %cst_10 : f32 to vector<128x256xf32>
    %32 = arith.subf %31, %30 : vector<128x256xf32>
    %33 = vector.broadcast %12 : vector<1x256xf32> to vector<128x256xf32>
    %34 = arith.addf %32, %33 : vector<128x256xf32>
    %c0_11 = arith.constant 0 : index
    %c0_12 = arith.constant 0 : index
    %c0_13 = arith.constant 0 : index
    %35 = vector.load %arg3[%c0_11, %c0_12, %c0_13] : memref<1x128x256xf32, #tpu.memory_space<vmem>>, vector<1x128x256xf32>
    %36 = vector.shape_cast %35 : vector<1x128x256xf32> to vector<128x256xf32>
    %37 = vector.shape_cast %34 : vector<128x256xf32> to vector<1x128x256xf32>
    tpu.vector_store %arg3[%c0_11, %c0_12, %c0_13], %37 {strides = array<i32>} : memref<1x128x256xf32, #tpu.memory_space<vmem>>, vector<1x128x256xf32>,
    return
  }
  func.func @transform_0(%arg0: i32, %arg1: i32) -> (i32, i32, i32) {
    %c0_i32 = arith.constant 0 : i32
    %c0_i32_0 = arith.constant 0 : i32
    %c0_i32_1 = arith.constant 0 : i32
    return %arg0, %c0_i32, %c0_i32_0 : i32, i32, i32
  }
  func.func @transform_1(%arg0: i32, %arg1: i32) -> (i32, i32, i32) {
    %c0_i32 = arith.constant 0 : i32
    %c0_i32_0 = arith.constant 0 : i32
    return %arg0, %arg1, %c0_i32 : i32, i32, i32
  }
}

</mosaic_0001>

<bundles_post_ra>
// kernel: tpu_custom_call.1
= control target key start
LH: loop header
LB: loop body
LE: loop exit
PB: predicated region body
PF: predicated region fallthrough
CT: control target
= control target key end

     0   :  { %6 = vsyncpa [#allocation3], 0  ;;  %s1251_s0 = inlined_call_operand.hbm [shape: f32[2,8,256], index: 0, kind: input, shape index: {}]   ;;  %s1252_s1 = inlined_call_operand.hbm [shape: f32[2,256,256], index: 1, kind: output, shape index: {}]  }
   0x1   :  { %8 = vsyncpa [#allocation3 + $0x1], 0 }
   0x2   :  { %9 = vsyncpa [#allocation4], 0 }
   0x3   :  { %11 = vsyncpa [#allocation4 + $0x1], 0  ;;  %s938_s6 = smov 0   ;;  %s940_s7 = smov 0  }
   0x4   :  { %s942_s8 = smov 0   ;;  %s944_s9 = smov 0  }
   0x5   :  { %s946_s10 = smov 0   ;;  %s948_s11 = smov 0  }
   0x6   :  { %s950_s12 = smov 0   ;;  %s952_s13 = smov 0  }
   0x7   :  { %s954_s14 = smov 0   ;;  %s956_s15 = smov 0  }
   0x8   :  { %s958_s16 = smov 0  }
   0x9 LB: > { %s620_s17 = sadd.s32 4294967295, %s921_s16   ;;  %s621_s18 = sadd.s32 4294967294, %s921_s16   ;;  %s921_s16 = sphi %s958_s16, %s17_s16   ;;  %s917_s15 = sphi %s956_s15, %s1272_s15   ;;  %s913_s14 = sphi %s954_s14, %s1271_s14   ;;  %s909_s13 = sphi %s952_s13, %s1270_s13   ;;  %s905_s12 = sphi %s950_s12, %s1269_s12   ;;  %s901_s11 = sphi %s948_s11, %s1268_s11   ;;  %s897_s10 = sphi %s946_s10, %s1267_s10   ;;  %s893_s9 = sphi %s944_s9, %s1266_s9   ;;  %s889_s8 = sphi %s942_s8, %s1265_s8   ;;  %s885_s7 = sphi %s940_s7, %s1264_s7   ;;  %s881_s6 = sphi %s938_s6, %s1263_s6  }
   0xa   : > { %s26_s19 = sadd.s32 1, %s913_s14  ;;  %s29_s20 = sadd.s32 1, %s917_s15 }
   0xb   : > { %p27_p0 = scmp.ge.s32.totalorder %s26_s19, 2  ;;  %s36_s21 = sadd.s32 1, %s901_s11 }
   0xc   : > { %p43_p1 = scmp.ne.s32.totalorder %s901_s11, %s897_s10  ;;  %p44_p2 = scmp.eq.s32.totalorder %s921_s16, 0 }
   0xd   : > { %s1274_s19 = smov (%p27_p0, %s26_s19), 0  ;;  %s1276_s20 = smov (!%p27_p0, %s29_s20), %s917_s15 }
   0xe   : > { %p1002_p3 = por %p44_p2, %p43_p1  ;;  %p49_p4 = scmp.ne.s32.totalorder %s897_s10, %s893_s9 }
   0xf   : > { %p31_p5 = scmp.ge.s32.totalorder %s1276_s20, 2  ;;  %p50_p6 = scmp.eq.s32.totalorder %s620_s17, 0 }
  0x10   : > { %s60_s23 = ssub.s32 %s913_s14, %s1274_s19  ;;  %s64_s24 = sadd.s32 1, %s889_s8 }
  0x11   : > { %s1278_s20 = smov (%p31_p5, %s1276_s20), 0  ;;  %p1012_p7 = por %p50_p6, %p49_p4 }
  0x12   : > { %p74_p8 = scmp.ne.s32.totalorder %s889_s8, %s885_s7  ;;  %s33_s26 = ssub.s32 %s917_s15, %s1278_s20 }
  0x13   : > { %p75_p9 = scmp.eq.s32.totalorder %s620_s17, 3  ;;  %p34_p10 = scmp.eq.s32.totalorder %s33_s26, 0 }
  0x14   : > { %s61_s27 = sor.u32 %s60_s23, %s33_s26  ;;  %p80_p13 = scmp.ne.s32.totalorder %s885_s7, %s881_s6 }
  0x15   : > { %p62_p11 = scmp.eq.s32.totalorder %s61_s27, 0  ;;  %p1020_p12 = por %p75_p9, %p74_p8 }
  0x16   : > { %s1025_s29 = scalar_select %p34_p10, %s901_s11, %s36_s21  }
  0x17   : > { %s1256_s28 = scalar_select %p1020_p12, 1, 0 }
  0x18   : > { %s1028_s30 = scalar_select %p62_p11, %s889_s8, %s64_s24  }
  0x19   : > { %p81_p0 = scmp.eq.s32.totalorder %s621_s18, 3  ;;  %p664_p1 = scmp.lt.s32.totalorder %s921_s16, 4 }
  0x1a   : > { %s101_s3 = sand.u32 1, %s901_s11   ;;  %s648_s5 = sshll.u32 %s917_s15, 8 }
  0x1b   : > { %p1033_p2 = por %p81_p0, %p80_p13  ;;  %s624_s4 = sshll.u32 %s101_s3, 4 }
  0x1c   : > { %s1042_s23 = scalar_lea.hbm %s1251_s0, %s648_s5  ;;  %s105_s21 = scalar_lea.vmem [#allocation2], %s624_s4 }
  0x1d   : > { %s1257_s2 = scalar_select %p1033_p2, 1, 0 }
  0x1e   : > { %s113_s24 = sshll.u32 %s105_s21, 4  ;;  %p1048_p4 = pnand %p664_p1, %p1002_p3  ;;  %s1044_s24 = int_to_ptr.vmem [resolvable:$true] %s113_s24 }
  0x1f   : > { %s102_s26 = scalar_lea.sflag [#allocation3], %s101_s3  ;;  %s769_s27 = scalar_lea.hbm %s1042_s23, 256 }
  0x20   : > { %p770_p8 = scmp.ne.s32.totalorder %s1042_s23, %s769_s27  ;;  %p771_p9 = pneg %p1048_p4 }
  0x21   : > { %s774_s22 = scalar_lea.hbm %s1251_s0, 512  ;;  %p775_p3 = scmp.lt.u32.totalorder %s1042_s23, %s1251_s0 }
  0x22   : > { %p772_p10 = pnand %p771_p9, %p770_p8  ;;  %p776_p13 = scmp.lt.u32.totalorder %s774_s22, %s769_s27 }
  0x23   : > { %p778_p1 = scmp.lt.u32.totalorder %s769_s27, %s1042_s23 }
  0x24   : > { %p773_p11 = pneg %p772_p10  ;;  %p777_p0 = por %p776_p13, %p775_p3 }
  0x26   : > { %p779_p5 = por %p778_p1, %p777_p0 }
  0x28   : > { %p780_p6 = pnand %p779_p5, %p773_p11 }
  0x2a   : > { %783 = shalt.err (!%p780_p6)
}
  0x2b   : > { %s784_s3 = scalar_lea.vmem %s1044_s24, 256  ;;  %s923_s21 = smov [#allocation2]  }
  0x2c   : > { %p785_p8 = scmp.ne.s32.totalorder %s1044_s24, %s784_s3  ;;  %s789_s4 = sshll.u32 %s923_s21, 4  ;;  %s790_s4 = int_to_ptr.vmem [resolvable:$false] %s789_s4 }
  0x2d   : > { %s791_s5 = scalar_lea.vmem %s790_s4, 512  ;;  %p792_p12 = scmp.lt.s32.totalorder %s1044_s24, %s790_s4 }
  0x2e   : > { %p787_p10 = pnand %p785_p8, %p771_p9  ;;  %p793_p3 = scmp.lt.s32.totalorder %s791_s5, %s784_s3 }
  0x30   : > { %p788_p2 = pneg %p787_p10  ;;  %p794_p13 = por %p793_p3, %p792_p12 }
  0x32   : > { %p795_p0 = pnand %p794_p13, %p788_p2 }
  0x34   : > { %798 = shalt.err (!%p795_p0)
}
  0x35   : > { %659 = dma.hbm_to_vmem [thread:$0]  (!%p1048_p4), %s1042_s23, 256, %s1044_s24, %s102_s26  }
  0x36   : > { %p1259_p5 = scmp.lt.s32.totalorder %s921_s16, 5  ;;  %p1260_p6 = scmp.ge.s32.totalorder %s921_s16, 1 }
  0x38   : > { %p119_p9 = pnand %p1260_p6, %p1259_p5 }
  0x39   : > { %s124_s27 = sand.u32 (!%p119_p9), 1, %s897_s10  }
  0x3a   : > { %122 = sbr.rel (%p119_p9) target bundleno = 496 (0x1f0), region = 24  ;;  %s628_s22 = sshll.u32 (!%p119_p9), %s124_s27, 4 }
  0x3b   : > { %s125_s9 = scalar_lea.sflag (!%p119_p9), [#allocation3], %s124_s27  ;;  %s128_s17 = scalar_lea.vmem (!%p119_p9), [#allocation2], %s628_s22 }
  0x41   : > { %872 = dma.done.wait (%p1012_p7), %s125_s9, 256  }
  0x42   : > { %874 = vsyncadd (%p1012_p7), %s125_s9, 4294967040  ;;  %s630_s18 = sshll.u32 %s905_s12, 7  ;;  %v924_v0 = vmov 0   ;;  %v150_v2 = vld [vmem:[%s128_s17 + $0x8] sm:$0xff]  ;;  %v149_v3 = vld [vmem:[%s128_s17] sm:$0xff]  ;;  %vm266_vm6 = vcmask 1043456  }
  0x43   : > { %s200_s3 = sshra.s32 %s630_s18, 7  ;;  %305 = vmatprep.mubr.bf16.mxu0 %v924_v0  ;;  %345 = vmatprep.mubr.bf16.mxu1 %v924_v0  ;;  %v152_v5 = vmul.f32 %v150_v2, %v150_v2  ;;  %v151_v6 = vmul.f32 %v149_v3, %v149_v3  ;;  %vm241_vm7 = vcmask 64512   ;;  %s144_s25 = sand.u32 1, %s885_s7  }
  0x44   : > { %s631_s23 = sshll.u32 %s200_s3, 3  ;;  %s629_s26 = sshll.u32 %s144_s25, 8 }
  0x45   : > { %s203_s24 = scalar_lea.vmem %s128_s17, %s631_s23 [#allocation2]  ;;  %v159_v8 = vrot.slane %v152_v5, 4  ;;  %v153_v9 = vrot.slane %v151_v6, 4  ;;  %s1114_s21 = scalar_lea.vmem [#allocation5], %s629_s26 }
  0x46   : > { %v204_v1 = vld [vmem:[%s203_s24] sm:$0xff]  ;;  %s649_s4 = sshll.u32 %s905_s12, 5  ;;  %s644_s5 = sshll.u32 %s909_s13, 6 }
  0x47   : > { %v205_v4 = vmul.f32 %v204_v1, %v204_v1  ;;  %v160_v11 = vadd.f32 %v159_v8, %v152_v5  ;;  %v154_v12 = vadd.f32 %v153_v9, %v151_v6  ;;  %s528_s27 = sadd.s32 %s649_s4, %s644_s5  ;;  %s531_s13 = sshll.u32 %s1114_s21, 4  ;;  %s1182_s13 = int_to_ptr.vmem [resolvable:$true] %s531_s13 }
  0x48   : > { %s645_s12 = sshll.u32 %s528_s27, 7  ;;  %s1190_s18 = scalar_lea.sflag [#allocation4], %s144_s25 }
  0x49   : > { %v206_v7 = vrot.slane %v205_v4, 4  ;;  %v161_v14 = vrot.slane %v160_v11, 2  ;;  %v155_v15 = vrot.slane %v154_v12, 2  ;;  %s1180_s17 = scalar_lea.hbm %s1252_s1, %s645_s12  ;;  %s799_s3 = scalar_lea.vmem %s1182_s13, 4096 }
  0x4a   : > { %p800_p7 = scmp.ne.s32.totalorder %s1182_s13, %s799_s3  ;;  %p1261_p12 = scmp.ne.s32.totalorder %s1256_s28, 0 }
  0x4b   : > { %v207_v10 = vadd.f32 %v206_v7, %v205_v4  ;;  %v162_v17 = vadd.f32 %v161_v14, %v160_v11  ;;  %v156_v18 = vadd.f32 %v155_v15, %v154_v12  ;;  %s925_s23 = smov [#allocation5]  }
  0x4c   : > { %p801_p2 = pnand %p800_p7, %p1261_p12  ;;  %s803_s24 = sshll.u32 %s925_s23, 4  ;;  %s804_s24 = int_to_ptr.vmem [resolvable:$false] %s803_s24 }
  0x4d   : > { %v208_v13 = vrot.slane %v207_v10, 2  ;;  %v163_v20 = vrot.slane %v162_v17, 1  ;;  %v157_v21 = vrot.slane %v156_v18, 1  ;;  %s805_s26 = scalar_lea.vmem %s804_s24, 8192  ;;  %p806_p11 = scmp.lt.s32.totalorder %s1182_s13, %s804_s24 }
  0x4e   : > { %p802_p4 = pneg %p801_p2  ;;  %p807_p1 = scmp.lt.s32.totalorder %s805_s26, %s799_s3 }
  0x4f   : > { %v209_v16 = vadd.f32 %v208_v13, %v207_v10  ;;  %v164_v23 = vadd.f32 %v163_v20, %v162_v17  ;;  %v158_v24 = vadd.f32 %v157_v21, %v156_v18 }
  0x50   : > { %p808_p8 = por %p807_p1, %p806_p11 }
  0x51   : > { %v210_v19 = vrot.slane %v209_v16, 1  ;;  %vm174_vm2 = vcmp.eq.f32.partialorder %v164_v23, inf  ;;  %v177_v29 = vand.u32 2147483648, %v164_v23  ;;  %vm176_vm3 = vcmp.eq.f32.partialorder %v164_v23, 0.0 }
  0x52   : > { %vm167_vm4 = vcmp.eq.f32.partialorder %v158_v24, inf  ;;  %v170_v32 = vand.u32 2147483648, %v158_v24  ;;  %vm169_vm5 = vcmp.eq.f32.partialorder %v158_v24, 0.0  ;;  %p809_p10 = pnand %p808_p8, %p802_p4 }
  0x53   : > { %v211_v22 = vadd.f32 %v210_v19, %v209_v16 }
  0x55   : > { %757 = vrsqrt.f32 %v211_v22  ;;  %vm214_vm0 = vcmp.eq.f32.partialorder %v211_v22, inf  ;;  %v217_v26 = vand.u32 2147483648, %v211_v22  ;;  %vm216_vm1 = vcmp.eq.f32.partialorder %v211_v22, 0.0 }
  0x56   : > { %759 = vrsqrt.f32 %v164_v23 }
  0x57   : > { %761 = vrsqrt.f32 %v158_v24 }
  0x5f   : > { %v758_v25 = vpop.eup %757 }
  0x60   : > { %v760_v27 = vpop.eup %759  ;;  %v213_v28 = vmul.f32 %v758_v25, %v211_v22 }
  0x61   : > { %v762_v30 = vpop.eup %761  ;;  %v173_v31 = vmul.f32 %v760_v27, %v164_v23 }
  0x62   : > { %v215_v33 = vsel %vm214_vm0, %v211_v22, %v213_v28  ;;  %v166_v34 = vmul.f32 %v762_v30, %v158_v24 }
  0x63   : > { %v218_v35 = vsel %vm216_vm1, %v217_v26, %v215_v33  ;;  %v175_v36 = vsel %vm174_vm2, %v164_v23, %v173_v31 }
  0x64   : > { %v219_v37 = vmax.f32 %v218_v35, 1e-12  ;;  %v178_v38 = vsel %vm176_vm3, %v177_v29, %v175_v36  ;;  %v168_v39 = vsel %vm167_vm4, %v158_v24, %v166_v34 }
  0x65   : > { %v180_v40 = vmax.f32 %v178_v38, 1e-12  ;;  %v171_v41 = vsel %vm169_vm5, %v170_v32, %v168_v39 }
  0x66   : > { %763 = vrcp.f32 %v219_v37  ;;  %v179_v42 = vmax.f32 %v171_v41, 1e-12 }
  0x67   : > { %765 = vrcp.f32 %v180_v40 }
  0x68   : > { %767 = vrcp.f32 %v179_v42 }
  0x70   : > { %v764_v43 = vpop.eup %763 }
  0x71   : > { %v766_v44 = vpop.eup %765  ;;  %v221_v45 = vmul.f32 %v764_v43, %v204_v1 }
  0x72   : > { %v768_v46 = vpop.eup %767  ;;  %v184_v47 = vmul.f32 %v766_v44, %v150_v2 }
  0x73   : > { %v222_v48 = vpack.c.bf16 %v221_v45, %v221_v45  ;;  %v182_v49 = vmul.f32 %v768_v46, %v149_v3 }
  0x74   : > { %v224_v50 = vpack.c.bf16 %v184_v47, %v184_v47  ;;  %v186_v62 = vmul.f32 %v184_v47, %v184_v47 }
  0x75   : > { %225 = vxpose.xlu0.c.b16.start.end [1/1] (short) %v222_v48, 128  ;;  %v223_v51 = vpack.c.bf16 %v182_v49, %v182_v49  ;;  %v185_v61 = vmul.f32 %v182_v49, %v182_v49 }
  0x76   : > { %632 = vmatprep.subr.msk.bf16.mxu0 %vm266_vm6, %v224_v50  ;;  %650 = vmatprep.subr.msk.bf16.mxu1 %vm266_vm6, %v224_v50  ;;  %v193_v1 = vrot.slane %v186_v62, 4 }
  0x77   : > { %v268_v52 = vsel %vm266_vm6, %v223_v51, 0  ;;  %v187_v63 = vrot.slane %v185_v61, 4 }
  0x78   : > { %274 = vmatpush1.bf16.msra.mxu0 %v268_v52  ;;  %651 = vmatpush1.bf16.msra.mxu1 %v268_v52  ;;  %v194_v3 = vadd.f32 %v193_v1, %v186_v62 }
  0x79   : > { %v188_v2 = vadd.f32 %v187_v63, %v185_v61 }
  0x7a   : > { %v195_v5 = vrot.slane %v194_v3, 2 }
  0x7b   : > { %v189_v4 = vrot.slane %v188_v2, 2 }
  0x7c   : > { %v196_v7 = vadd.f32 %v195_v5, %v194_v3 }
  0x7d   : > { %v190_v6 = vadd.f32 %v189_v4, %v188_v2 }
  0x7e   : > { %v197_v9 = vrot.slane %v196_v7, 1 }
  0x7f   : > { %v191_v8 = vrot.slane %v190_v6, 1 }
  0x80   : > { %v1110_v13 = vadd.f32 %v197_v9, %v196_v7 }
  0x81   : > { %v1106_v11 = vadd.f32 %v191_v8, %v190_v6 }
  0xdb   : > { %v233_v53 = vpop.trf.xlu0 }
  0xdc   : > { %633 = vmatmul.mubr.msk.bf16.vlgmr.msra.gmra.mrb[0].mxu0 %vm241_vm7, %v233_v53 }
  0xdd   : > { %315 = vmatprep.mubr.bf16.mxu0 %v924_v0 }
  0xdf   : > { %v234_v54 = vpop.trf.xlu0 }
  0xe3   : > { %v235_v55 = vpop.trf.xlu0 }
  0xe4   : > { %634 = vmatmul.mubr.msk.bf16.gmra.mrb[4].mxu0 %vm241_vm7, %v234_v54 }
  0xe5   : > { %325 = vmatprep.mubr.bf16.mxu0 %v924_v0 }
  0xe7   : > { %v236_v56 = vpop.trf.xlu0 }
  0xeb   : > { %v237_v57 = vpop.trf.xlu0 }
  0xec   : > { %635 = vmatmul.mubr.msk.bf16.gmra.mrb[8].mxu0 %vm241_vm7, %v235_v55  ;;  %637 = vmatmul.mubr.msk.bf16.vlgmr.msra.gmra.mrb[0].mxu1 %vm241_vm7, %v237_v57 }
  0xed   : > { %335 = vmatprep.mubr.bf16.mxu0 %v924_v0  ;;  %355 = vmatprep.mubr.bf16.mxu1 %v924_v0 }
  0xef   : > { %v238_v58 = vpop.trf.xlu0 }
  0xf3   : > { %v239_v59 = vpop.trf.xlu0 }
  0xf4   : > { %636 = vmatmul.mubr.msk.bf16.gmra.mrb[12].mxu0 %vm241_vm7, %v236_v56  ;;  %638 = vmatmul.mubr.msk.bf16.gmra.mrb[4].mxu1 %vm241_vm7, %v238_v58 }
  0xf5   : > { %365 = vmatprep.mubr.bf16.mxu1 %v924_v0 }
  0xf7   : > { %v240_v60 = vpop.trf.xlu0 }
  0xfc   : > { %639 = vmatmul.mubr.msk.bf16.gmra.mrb[8].mxu1 %vm241_vm7, %v239_v59 }
  0xfd   : > { %375 = vmatprep.mubr.bf16.mxu1 %v924_v0 }
 0x104   : > { %640 = vmatmul.mubr.msk.bf16.gmra.mrb[12].mxu1 %vm241_vm7, %v240_v60 }
 0x1af   : > { %v307_v10 = vpop.f32.mrb[0].mxu0 }
 0x1b0   : > { %v386_v0 = vmul.f32 2.0, %v307_v10  ;;  %v309_v12 = vpop.f32.mrb[1].mxu0 }
 0x1b1   : > { %v387_v14 = vmul.f32 2.0, %v309_v12  ;;  %v311_v15 = vpop.f32.mrb[2].mxu0 }
 0x1b2   : > { %v418_v16 = vsub.f32 1.0, %v386_v0  ;;  %v388_v17 = vmul.f32 2.0, %v311_v15  ;;  %v313_v18 = vpop.f32.mrb[3].mxu0 }
 0x1b3   : > { %v419_v19 = vsub.f32 1.0, %v387_v14  ;;  %v389_v20 = vmul.f32 2.0, %v313_v18 }
 0x1b4   : > { %v450_v21 = vadd.f32 %v418_v16, %v1106_v11  ;;  %v420_v22 = vsub.f32 1.0, %v388_v17 }
 0x1b5   : > { %v451_v23 = vadd.f32 %v419_v19, %v1110_v13  ;;  %v421_v24 = vsub.f32 1.0, %v389_v20 }
 0x1b6   : > { %482 = vst [vmem:[%s1114_s21] sm:$0xff] %v450_v21  ;;  %v452_v25 = vadd.f32 %v420_v22, %v1106_v11 }
 0x1b7   : > { %483 = vst [vmem:[%s1114_s21 + $0x8] sm:$0xff] %v451_v23  ;;  %v453_v26 = vadd.f32 %v421_v24, %v1110_v13  ;;  %v317_v27 = vpop.f32.mrb[4].mxu0 }
 0x1b8   : > { %484 = vst [vmem:[%s1114_s21 + $0x10] sm:$0xff] %v452_v25  ;;  %v390_v28 = vmul.f32 2.0, %v317_v27  ;;  %v319_v29 = vpop.f32.mrb[5].mxu0 }
 0x1b9   : > { %485 = vst [vmem:[%s1114_s21 + $0x18] sm:$0xff] %v453_v26  ;;  %v391_v30 = vmul.f32 2.0, %v319_v29  ;;  %v321_v31 = vpop.f32.mrb[6].mxu0 }
 0x1ba   : > { %v422_v32 = vsub.f32 1.0, %v390_v28  ;;  %v392_v33 = vmul.f32 2.0, %v321_v31  ;;  %v323_v34 = vpop.f32.mrb[7].mxu0 }
 0x1bb   : > { %v423_v35 = vsub.f32 1.0, %v391_v30  ;;  %v393_v36 = vmul.f32 2.0, %v323_v34 }
 0x1bc   : > { %v454_v37 = vadd.f32 %v422_v32, %v1106_v11  ;;  %v424_v38 = vsub.f32 1.0, %v392_v33 }
 0x1bd   : > { %v455_v39 = vadd.f32 %v423_v35, %v1110_v13  ;;  %v425_v40 = vsub.f32 1.0, %v393_v36 }
 0x1be   : > { %486 = vst [vmem:[%s1114_s21 + $0x20] sm:$0xff] %v454_v37  ;;  %v456_v41 = vadd.f32 %v424_v38, %v1106_v11 }
 0x1bf   : > { %487 = vst [vmem:[%s1114_s21 + $0x28] sm:$0xff] %v455_v39  ;;  %v457_v42 = vadd.f32 %v425_v40, %v1110_v13  ;;  %v327_v43 = vpop.f32.mrb[8].mxu0  ;;  %v347_v44 = vpop.f32.mrb[0].mxu1 }
 0x1c0   : > { %488 = vst [vmem:[%s1114_s21 + $0x30] sm:$0xff] %v456_v41  ;;  %v394_v45 = vmul.f32 2.0, %v327_v43  ;;  %v402_v46 = vmul.f32 2.0, %v347_v44  ;;  %v329_v47 = vpop.f32.mrb[9].mxu0  ;;  %v349_v48 = vpop.f32.mrb[1].mxu1 }
 0x1c1   : > { %489 = vst [vmem:[%s1114_s21 + $0x38] sm:$0xff] %v457_v42  ;;  %v395_v49 = vmul.f32 2.0, %v329_v47  ;;  %v403_v50 = vmul.f32 2.0, %v349_v48  ;;  %v331_v51 = vpop.f32.mrb[10].mxu0  ;;  %v351_v52 = vpop.f32.mrb[2].mxu1 }
 0x1c2   : > { %v426_v53 = vsub.f32 1.0, %v394_v45  ;;  %v434_v54 = vsub.f32 1.0, %v402_v46  ;;  %v396_v55 = vmul.f32 2.0, %v331_v51  ;;  %v404_v56 = vmul.f32 2.0, %v351_v52  ;;  %v333_v57 = vpop.f32.mrb[11].mxu0  ;;  %v353_v58 = vpop.f32.mrb[3].mxu1 }
 0x1c3   : > { %v427_v59 = vsub.f32 1.0, %v395_v49  ;;  %v435_v60 = vsub.f32 1.0, %v403_v50  ;;  %v397_v61 = vmul.f32 2.0, %v333_v57  ;;  %v405_v62 = vmul.f32 2.0, %v353_v58 }
 0x1c4   : > { %v458_v63 = vadd.f32 %v426_v53, %v1106_v11  ;;  %v466_v1 = vadd.f32 %v434_v54, %v1106_v11  ;;  %v428_v2 = vsub.f32 1.0, %v396_v55  ;;  %v436_v3 = vsub.f32 1.0, %v404_v56 }
 0x1c5   : > { %v459_v4 = vadd.f32 %v427_v59, %v1110_v13  ;;  %v467_v5 = vadd.f32 %v435_v60, %v1110_v13  ;;  %v429_v6 = vsub.f32 1.0, %v397_v61  ;;  %v437_v7 = vsub.f32 1.0, %v405_v62 }
 0x1c6   : > { %490 = vst [vmem:[%s1114_s21 + $0x40] sm:$0xff] %v458_v63  ;;  %498 = vst [vmem:[%s1114_s21 + $0x80] sm:$0xff] %v466_v1  ;;  %v460_v8 = vadd.f32 %v428_v2, %v1106_v11  ;;  %v468_v9 = vadd.f32 %v436_v3, %v1106_v11 }
 0x1c7   : > { %491 = vst [vmem:[%s1114_s21 + $0x48] sm:$0xff] %v459_v4  ;;  %499 = vst [vmem:[%s1114_s21 + $0x88] sm:$0xff] %v467_v5  ;;  %v461_v10 = vadd.f32 %v429_v6, %v1110_v13  ;;  %v469_v0 = vadd.f32 %v437_v7, %v1110_v13  ;;  %v337_v12 = vpop.f32.mrb[12].mxu0  ;;  %v357_v14 = vpop.f32.mrb[4].mxu1 }
 0x1c8   : > { %492 = vst [vmem:[%s1114_s21 + $0x50] sm:$0xff] %v460_v8  ;;  %500 = vst [vmem:[%s1114_s21 + $0x90] sm:$0xff] %v468_v9  ;;  %v398_v15 = vmul.f32 2.0, %v337_v12  ;;  %v406_v16 = vmul.f32 2.0, %v357_v14  ;;  %v339_v17 = vpop.f32.mrb[13].mxu0  ;;  %v359_v18 = vpop.f32.mrb[5].mxu1 }
 0x1c9   : > { %493 = vst [vmem:[%s1114_s21 + $0x58] sm:$0xff] %v461_v10  ;;  %501 = vst [vmem:[%s1114_s21 + $0x98] sm:$0xff] %v469_v0  ;;  %v399_v19 = vmul.f32 2.0, %v339_v17  ;;  %v407_v20 = vmul.f32 2.0, %v359_v18  ;;  %v341_v21 = vpop.f32.mrb[14].mxu0  ;;  %v361_v22 = vpop.f32.mrb[6].mxu1 }
 0x1ca   : > { %v430_v23 = vsub.f32 1.0, %v398_v15  ;;  %v438_v24 = vsub.f32 1.0, %v406_v16  ;;  %v400_v25 = vmul.f32 2.0, %v341_v21  ;;  %v408_v26 = vmul.f32 2.0, %v361_v22  ;;  %v343_v27 = vpop.f32.mrb[15].mxu0  ;;  %v363_v28 = vpop.f32.mrb[7].mxu1 }
 0x1cb   : > { %v431_v29 = vsub.f32 1.0, %v399_v19  ;;  %v439_v30 = vsub.f32 1.0, %v407_v20  ;;  %v401_v31 = vmul.f32 2.0, %v343_v27  ;;  %v409_v32 = vmul.f32 2.0, %v363_v28 }
 0x1cc   : > { %v462_v33 = vadd.f32 %v430_v23, %v1106_v11  ;;  %v470_v34 = vadd.f32 %v438_v24, %v1106_v11  ;;  %v432_v35 = vsub.f32 1.0, %v400_v25  ;;  %v440_v36 = vsub.f32 1.0, %v408_v26 }
 0x1cd   : > { %v463_v37 = vadd.f32 %v431_v29, %v1110_v13  ;;  %v471_v38 = vadd.f32 %v439_v30, %v1110_v13  ;;  %v433_v39 = vsub.f32 1.0, %v401_v31  ;;  %v441_v40 = vsub.f32 1.0, %v409_v32 }
 0x1ce   : > { %494 = vst [vmem:[%s1114_s21 + $0x60] sm:$0xff] %v462_v33  ;;  %502 = vst [vmem:[%s1114_s21 + $0xa0] sm:$0xff] %v470_v34  ;;  %v464_v41 = vadd.f32 %v432_v35, %v1106_v11  ;;  %v472_v42 = vadd.f32 %v440_v36, %v1106_v11 }
 0x1cf   : > { %495 = vst [vmem:[%s1114_s21 + $0x68] sm:$0xff] %v463_v37  ;;  %503 = vst [vmem:[%s1114_s21 + $0xa8] sm:$0xff] %v471_v38  ;;  %v465_v43 = vadd.f32 %v433_v39, %v1110_v13  ;;  %v473_v44 = vadd.f32 %v441_v40, %v1110_v13  ;;  %v367_v45 = vpop.f32.mrb[8].mxu1 }
 0x1d0   : > { %496 = vst [vmem:[%s1114_s21 + $0x70] sm:$0xff] %v464_v41  ;;  %504 = vst [vmem:[%s1114_s21 + $0xb0] sm:$0xff] %v472_v42  ;;  %v410_v46 = vmul.f32 2.0, %v367_v45  ;;  %v369_v47 = vpop.f32.mrb[9].mxu1 }
 0x1d1   : > { %497 = vst [vmem:[%s1114_s21 + $0x78] sm:$0xff] %v465_v43  ;;  %505 = vst [vmem:[%s1114_s21 + $0xb8] sm:$0xff] %v473_v44  ;;  %v411_v48 = vmul.f32 2.0, %v369_v47  ;;  %v371_v49 = vpop.f32.mrb[10].mxu1 }
 0x1d2   : > { %v442_v50 = vsub.f32 1.0, %v410_v46  ;;  %v412_v51 = vmul.f32 2.0, %v371_v49  ;;  %v373_v52 = vpop.f32.mrb[11].mxu1 }
 0x1d3   : > { %v443_v53 = vsub.f32 1.0, %v411_v48  ;;  %v413_v54 = vmul.f32 2.0, %v373_v52 }
 0x1d4   : > { %v474_v55 = vadd.f32 %v442_v50, %v1106_v11  ;;  %v444_v56 = vsub.f32 1.0, %v412_v51 }
 0x1d5   : > { %v475_v57 = vadd.f32 %v443_v53, %v1110_v13  ;;  %v445_v58 = vsub.f32 1.0, %v413_v54 }
 0x1d6   : > { %506 = vst [vmem:[%s1114_s21 + $0xc0] sm:$0xff] %v474_v55  ;;  %v476_v59 = vadd.f32 %v444_v56, %v1106_v11 }
 0x1d7   : > { %507 = vst [vmem:[%s1114_s21 + $0xc8] sm:$0xff] %v475_v57  ;;  %v477_v60 = vadd.f32 %v445_v58, %v1110_v13  ;;  %v377_v61 = vpop.f32.mrb[12].mxu1 }
 0x1d8   : > { %508 = vst [vmem:[%s1114_s21 + $0xd0] sm:$0xff] %v476_v59  ;;  %v414_v62 = vmul.f32 2.0, %v377_v61  ;;  %v379_v63 = vpop.f32.mrb[13].mxu1 }
 0x1d9   : > { %509 = vst [vmem:[%s1114_s21 + $0xd8] sm:$0xff] %v477_v60  ;;  %v415_v1 = vmul.f32 2.0, %v379_v63  ;;  %v381_v2 = vpop.f32.mrb[14].mxu1 }
 0x1da   : > { %v446_v3 = vsub.f32 1.0, %v414_v62  ;;  %v416_v4 = vmul.f32 2.0, %v381_v2  ;;  %v383_v5 = vpop.f32.mrb[15].mxu1 }
 0x1db   : > { %v447_v6 = vsub.f32 1.0, %v415_v1  ;;  %v417_v7 = vmul.f32 2.0, %v383_v5 }
 0x1dc   : > { %v478_v8 = vadd.f32 %v446_v3, %v1106_v11  ;;  %v448_v9 = vsub.f32 1.0, %v416_v4 }
 0x1dd   : > { %v479_v10 = vadd.f32 %v447_v6, %v1110_v13  ;;  %v449_v0 = vsub.f32 1.0, %v417_v7 }
 0x1de   : > { %510 = vst [vmem:[%s1114_s21 + $0xe0] sm:$0xff] %v478_v8  ;;  %v480_v12 = vadd.f32 %v448_v9, %v1106_v11 }
 0x1df   : > { %511 = vst [vmem:[%s1114_s21 + $0xe8] sm:$0xff] %v479_v10  ;;  %v481_v14 = vadd.f32 %v449_v0, %v1110_v13 }
 0x1e0   : > { %512 = vst [vmem:[%s1114_s21 + $0xf0] sm:$0xff] %v480_v12 }
 0x1e1   : > { %513 = vst [vmem:[%s1114_s21 + $0xf8] sm:$0xff] %v481_v14 }
 0x1e2   : > { %812 = shalt.err (!%p809_p10)
}
 0x1e3   : > { %s813_s25 = scalar_lea.hbm %s1180_s17, 4096  ;;  %s817_s5 = scalar_lea.hbm %s1252_s1, 16384 }
 0x1e4   : > { %p814_p3 = scmp.ne.s32.totalorder %s1180_s17, %s813_s25  ;;  %p818_p5 = scmp.lt.u32.totalorder %s1180_s17, %s1252_s1 }
 0x1e5   : > { %p819_p6 = scmp.lt.u32.totalorder %s817_s5, %s813_s25  ;;  %p821_p7 = scmp.lt.u32.totalorder %s813_s25, %s1180_s17 }
 0x1e6   : > { %p815_p13 = pnand %p814_p3, %p1261_p12 }
 0x1e7   : > { %p820_p9 = por %p819_p6, %p818_p5 }
 0x1e8   : > { %p816_p0 = pneg %p815_p13 }
 0x1e9   : > { %p822_p2 = por %p821_p7, %p820_p9 }
 0x1eb   : > { %p823_p4 = pnand %p822_p2, %p816_p0 }
 0x1ed   : > { %826 = shalt.err (!%p823_p4)
}
 0x1ee   : > { %s926_s22 = smov 256   ;;  %s927_s9 = smov 16  }
 0x1ef   : > { %654 = dma.vmem_to_hbm [thread:$0]  (%p1261_p12), %s1182_s13, 4096, %s1180_s17, %s1190_s18, %s926_s22, %s926_s22, %s927_s9  }
 0x1f0 PF: > { %p665_p11 = scmp.ge.s32.totalorder %s921_s16, 2  ;;  %s546_s3 = sand.u32 1, %s881_s6  }
 0x1f1   : > { %p1262_p1 = scmp.ne.s32.totalorder %s1257_s2, 0  ;;  %s547_s23 = scalar_lea.sflag [#allocation4], %s546_s3 }
 0x1f3   : > { %p661_p8 = pnand %p665_p11, %p1262_p1 }
 0x1f5   : > { %876 = dma.done.wait (!%p661_p8), %s547_s23, 4096  }
 0x1f6   : > { %878 = vsyncadd (!%p661_p8), %s547_s23, 4294963200  ;;  %s17_s16 = sadd.s32 1, %s921_s16   ;;  %s1263_s6 = smov %s885_s7 }
 0x1f7   : > { %p14_p10 = scmp.ge.s32.totalorder %s17_s16, 6   ;;  %s1264_s7 = smov %s889_s8 }
 0x1f8   : > { %s1265_s8 = smov %s1028_s30  ;;  %s1266_s9 = smov %s897_s10 }
 0x1f9   : > { %s1267_s10 = smov %s901_s11  ;;  %s1268_s11 = smov %s1025_s29 }
 0x1fa   : > { %s1269_s12 = smov %s913_s14  ;;  %s1270_s13 = smov %s917_s15 }
 0x1fb   : > { %s1271_s14 = smov %s1274_s19  ;;  %s1272_s15 = smov %s1278_s20 }
 0x1fc   :  { %16 = sbr.rel (!%p14_p10) target bundleno = 9 (0x9), region = 70 }
 0x203   :  { %552 = vsyncpa [#allocation3], 1 }
 0x204   :  { %554 = vsyncpa [#allocation3 + $0x1], 1 }
 0x205   :  { %555 = vsyncpa [#allocation4], 1 }
 0x206   :  { %557 = vsyncpa [#allocation4 + $0x1], 1 }

</bundles_post_ra>
